<compile_context>
chip_gen: v5e
topology: v5e:2x2
jax: 0.10.0
libtpu: 0.0.40
codegen_flags: <defaults>
</compile_context>

<pallas_src>
import jax
import jax.numpy as jnp
import numpy as np
from jax.experimental import pallas as pl
from jax.experimental.pallas import tpu as pltpu

# ----------------------------- configuration ------------------------------
MAX_LEN = 14              # config.max_len
SEQ_LEN = MAX_LEN + 2     # Embedding uses max_len + 2          = 16
D_MODEL = 32              # config.d_model (Conv1d in_channels=32)
VOCAB = 24                # config.vocab_size
KSIZE = 3                 # config.kernel_size
CONV_OUT = 256
FC_HID = 32
NUM_CLASS = 2             # config.num_class
BATCH = 2

L_CONV = SEQ_LEN - KSIZE + 1   # Conv1d 'valid' output length   = 14
L_POOL = L_CONV // 2           # MaxPool1d(kernel_size=2)       = 7
LN_EPS = 1e-5
BN_EPS = 1e-5

KD = KSIZE * D_MODEL           # 96  (im2col lane width)
BS = BATCH * SEQ_LEN           # 32  (batch folded into sublanes)
OUT_ROWS = 8                   # lane/sublane-dense output slab
OUT_LANES = 128


def _leaky(v):
    return jnp.where(v > 0, v, 0.1 * v)


# ------------------------------- kernel ------------------------------------
def adapt_emb_cnn_kernel(
    onehot_ref,   # (B*S, V+S)       [token one-hot | positional selector]
    emb_tab_ref,  # (V+S, K*D)       [tok table ; pos table], lane-tripled
    conv_ref,     # (K*D + 1, C_out) rows 0..95: LN-folded conv weight, row 96: bias
    fc1_ref,      # (C_out + 1, 32)  rows 0..255: BN+1/L folded fc1 weight, row 256: bias
    head_ref,     # (FC_HID + 1, 128) rows 0..31: fused fc2+classifier head, row 32: bias
    out_ref,      # out: (8, 128) f32 slab
):
    f32 = jnp.float32

    # --- Embedding: token + positional lookup in ONE batched matmul ----------
    emb = jnp.dot(onehot_ref[...], emb_tab_ref[...],
                  preferred_element_type=f32)                       # (32, 96)

    # --- LayerNorm over d_model (96-lane stats == 32-lane stats: 3 copies) ---
    # gamma/beta are folded into the conv weight/bias in the wrapper.
    mu = jnp.mean(emb, axis=-1, keepdims=True)
    var = jnp.mean((emb - mu) ** 2, axis=-1, keepdims=True)
    x3 = (emb - mu) * jax.lax.rsqrt(var + LN_EPS)                   # (32, 96)

    # --- im2col via whole-array sublane rolls (XLU), no misaligned slices ----
    # lane block k of row r must hold x[r + k]; positive shifts only.
    x1 = pltpu.roll(x3, BS - 1, axis=0)                             # row r -> x3[r+1]
    x2 = pltpu.roll(x3, BS - 2, axis=0)                             # row r -> x3[r+2]
    lane = jax.lax.broadcasted_iota(jnp.int32, (BS, KD), 1)
    x_shift = jnp.where(lane < D_MODEL, x3,
                        jnp.where(lane < 2 * D_MODEL, x1, x2))      # (32, 96)

    # --- Conv1d(32->256, K, valid) as ONE contraction + LeakyReLU(0.1) -------
    # rows t=14,15 per batch block are cross-batch/wrapped garbage; they are
    # never picked up by the pool selector below.
    y = jnp.dot(x_shift, conv_ref[:KD, :], preferred_element_type=f32)
    y = _leaky(y + conv_ref[KD:KD + 1, :])                          # (32, 256)

    # --- MaxPool1d(2): pairwise-adjacent max via one sublane roll -------------
    pm = jnp.maximum(y, pltpu.roll(y, BS - 1, axis=0))              # pm[r]=max(y[r],y[r+1])

    # --- pool + mean-over-time selector, built in-kernel from iotas ----------
    # feat[b] = sum_j pm[b*S + 2j], j=0..L_POOL-1 ; rows 2..7 are all-zero.
    row = jax.lax.broadcasted_iota(jnp.int32, (OUT_ROWS, BS), 0)
    col = jax.lax.broadcasted_iota(jnp.int32, (OUT_ROWS, BS), 1)
    sel = ((col >= row * SEQ_LEN) & (col < row * SEQ_LEN + L_CONV)
           & (col % 2 == 0)).astype(f32)                            # (8, 32)
    feat = jnp.dot(sel, pm, preferred_element_type=f32)             # (8, 256)

    # --- fc_task fc1 (BN(eval) + 1/L_POOL folded) -> LeakyReLU ---------------
    h = _leaky(jnp.dot(feat, fc1_ref[:CONV_OUT, :], preferred_element_type=f32)
               + fc1_ref[CONV_OUT:CONV_OUT + 1, :])                 # (8, 32)

    # --- fused fc2 + classifier head; sigmoid only on classifier lanes -------
    out = (jnp.dot(h, head_ref[:FC_HID, :], preferred_element_type=f32)
           + head_ref[FC_HID:FC_HID + 1, :])                        # (8, 128)
    lane_o = jax.lax.broadcasted_iota(jnp.int32, (OUT_ROWS, OUT_LANES), 1)
    out_ref[...] = jnp.where(lane_o < NUM_CLASS, jax.nn.sigmoid(out), out)


# ------------------------------- wrapper ------------------------------------
@jax.jit
def adapt_emb_cnn(ids, p):
    """ids: (B, S) int32 token ids. Returns (logits_clsf, representation)."""
    f32 = jnp.float32

    # One-hot + positional selector fused into one matrix (embedding is 1 matmul).
    onehot = jax.nn.one_hot(ids.reshape(-1), VOCAB, dtype=f32)          # (32, 24)
    pos_sel = jnp.tile(jnp.eye(SEQ_LEN, dtype=f32), (BATCH, 1))         # (32, 16)
    onehot_aug = jnp.concatenate([onehot, pos_sel], axis=1)             # (32, 40)

    # Lane-tripled embedding tables stacked into one slab.
    tok3 = jnp.concatenate([p["tok"]] * KSIZE, axis=1)                  # (24, 96)
    pos3 = jnp.concatenate([p["pos"]] * KSIZE, axis=1)                  # (16, 96)
    emb_tab = jnp.concatenate([tok3, pos3], axis=0)                     # (40, 96)

    # LayerNorm affine folded into the conv (exact): x = norm*g + b  =>
    #   W_k <- diag(g) W_k ;  conv_b <- conv_b + b @ sum_k W_k
    conv_w_f = (p["conv_w"] * p["ln_g"].reshape(1, D_MODEL, 1)).reshape(KD, CONV_OUT)
    conv_b_f = p["conv_b"] + p["ln_b"] @ p["conv_w"].sum(axis=0)        # (1, 256)
    conv_slab = jnp.concatenate([conv_w_f, conv_b_f], axis=0)           # (97, 256)

    # BatchNorm (eval) -> per-channel affine; fold it + 1/L_POOL into fc1 (exact).
    bn_scale = p["bn_g"] / jnp.sqrt(p["bn_v"] + BN_EPS)                 # (1, C_out)
    bn_shift = p["bn_b"] - p["bn_m"] * bn_scale                         # (1, C_out)
    fc1_w_f = p["fc1_w"] * (bn_scale.reshape(-1, 1) / L_POOL)           # (256, 32)
    fc1_b_f = bn_shift @ p["fc1_w"] + p["fc1_b"]                        # (1, 32)
    fc1_slab = jnp.concatenate([fc1_w_f, fc1_b_f], axis=0)              # (257, 32)

    # Fuse fc2 + classifier into one lane-padded head:
    #   lanes [0, NUM_CLASS)           -> pre-sigmoid classifier logits
    #   lanes [NUM_CLASS, NUM_CLASS+2) -> representation (fc2 output)
    w_logit = p["fc2_w"] @ p["clf_w"]                                   # (32, 2)
    b_logit = p["fc2_b"] @ p["clf_w"] + p["clf_b"]                      # (1, 2)
    pad = OUT_LANES - NUM_CLASS - 2
    w_head = jnp.concatenate([w_logit, p["fc2_w"],
                              jnp.zeros((FC_HID, pad), f32)], axis=1)   # (32, 128)
    b_head = jnp.concatenate([b_logit, p["fc2_b"],
                              jnp.zeros((1, pad), f32)], axis=1)        # (1, 128)
    head_slab = jnp.concatenate([w_head, b_head], axis=0)               # (33, 128)

    inputs = (onehot_aug, emb_tab, conv_slab, fc1_slab, head_slab)      # 5 DMAs
    vmem = lambda: pl.BlockSpec(memory_space=pltpu.MemorySpace.VMEM)
    slab = pl.pallas_call(
        adapt_emb_cnn_kernel,
        out_shape=jax.ShapeDtypeStruct((OUT_ROWS, OUT_LANES), jnp.float32),
        in_specs=[vmem() for _ in inputs],
        out_specs=vmem(),
        cost_estimate=pl.CostEstimate(flops=2_000_000, transcendentals=2_000,
                                      bytes_accessed=200_000),
    )(*inputs)

    logits = slab[:BATCH, :NUM_CLASS]
    rep = slab[:BATCH, NUM_CLASS:NUM_CLASS + 2]
    return logits, rep


# ------------------------- pure-JAX reference -------------------------------
def reference(ids, p):
    onehot = jax.nn.one_hot(ids, VOCAB, dtype=jnp.float32)          # (B, S, V)
    emb = onehot @ p["tok"] + p["pos"][None]                        # (B, S, D)
    mu = emb.mean(-1, keepdims=True)
    var = ((emb - mu) ** 2).mean(-1, keepdims=True)
    x = (emb - mu) / jnp.sqrt(var + LN_EPS) * p["ln_g"] + p["ln_b"]
    acc = jnp.zeros((BATCH, L_CONV, CONV_OUT), jnp.float32)
    for k in range(KSIZE):
        acc = acc + x[:, k:k + L_CONV, :] @ p["conv_w"][k]
    y = _leaky(acc + p["conv_b"])
    yp = jnp.maximum(y[:, 0::2, :][:, :L_POOL], y[:, 1::2, :][:, :L_POOL])
    bn = ((yp - p["bn_m"]) / jnp.sqrt(p["bn_v"] + BN_EPS)) * p["bn_g"] + p["bn_b"]
    feat = bn.mean(axis=1)                                          # (B, C_out)
    h = _leaky(feat @ p["fc1_w"] + p["fc1_b"])
    rep = h @ p["fc2_w"] + p["fc2_b"]
    logits = jax.nn.sigmoid(rep @ p["clf_w"] + p["clf_b"])
    return logits, rep


# --------------------------- parameter init ---------------------------------
def init_params(key):
    ks = jax.random.split(key, 12)
    p = {}
    p["tok"] = 0.5 * jax.random.normal(ks[0], (VOCAB, D_MODEL), jnp.float32)
    p["pos"] = 0.5 * jax.random.normal(ks[1], (SEQ_LEN, D_MODEL), jnp.float32)
    p["ln_g"] = jnp.ones((1, D_MODEL), jnp.float32)
    p["ln_b"] = jnp.zeros((1, D_MODEL), jnp.float32)
    p["conv_w"] = jax.random.normal(ks[2], (KSIZE, D_MODEL, CONV_OUT),
                                    jnp.float32) / np.sqrt(D_MODEL * KSIZE)
    p["conv_b"] = 0.05 * jax.random.normal(ks[3], (1, CONV_OUT), jnp.float32)
    p["bn_g"] = 1.0 + 0.1 * jax.random.normal(ks[4], (1, CONV_OUT), jnp.float32)
    p["bn_b"] = 0.1 * jax.random.normal(ks[5], (1, CONV_OUT), jnp.float32)
    p["bn_m"] = 0.1 * jax.random.normal(ks[6], (1, CONV_OUT), jnp.float32)
    p["bn_v"] = 1.0 + 0.5 * jax.random.uniform(ks[7], (1, CONV_OUT), jnp.float32)
    p["fc1_w"] = jax.random.normal(ks[8], (CONV_OUT, FC_HID),
                                   jnp.float32) / np.sqrt(CONV_OUT)
    p["fc1_b"] = jnp.zeros((1, FC_HID), jnp.float32)
    p["fc2_w"] = jax.random.normal(ks[9], (FC_HID, 2),
                                   jnp.float32) / np.sqrt(FC_HID)
    p["fc2_b"] = jnp.zeros((1, 2), jnp.float32)
    p["clf_w"] = jax.random.normal(ks[10], (2, NUM_CLASS),
                                   jnp.float32) / np.sqrt(2.0)
    p["clf_b"] = jnp.zeros((1, NUM_CLASS), jnp.float32)
    return p


if __name__ == "__main__":
    key = jax.random.PRNGKey(0)
    k_ids, k_params = jax.random.split(key)
    ids = jax.random.randint(k_ids, (BATCH, SEQ_LEN), 0, VOCAB, dtype=jnp.int32)
    params = init_params(k_params)

    logits, rep = jax.block_until_ready(adapt_emb_cnn(ids, params))
    ref_logits, ref_rep = reference(ids, params)

    assert logits.shape == (BATCH, NUM_CLASS) and rep.shape == (BATCH, 2)
    np.testing.assert_allclose(np.asarray(rep), np.asarray(ref_rep),
                               atol=5e-2, rtol=5e-2)
    np.testing.assert_allclose(np.asarray(logits), np.asarray(ref_logits),
                               atol=5e-3, rtol=5e-2)
    print("KERNEL_OK")
</pallas_src>

<mosaic_0001>
module attributes {stable_mosaic.version = 11 : i64} {
  func.func @adapt_emb_cnn_kernel(%arg0: memref<32x40xf32, #tpu.memory_space<vmem>>, %arg1: memref<40x96xf32, #tpu.memory_space<vmem>>, %arg2: memref<97x256xf32, #tpu.memory_space<vmem>>, %arg3: memref<257x32xf32, #tpu.memory_space<vmem>>, %arg4: memref<33x128xf32, #tpu.memory_space<vmem>>, %arg5: memref<8x128xf32, #tpu.memory_space<vmem>>) attributes {dimension_semantics = [], scalar_prefetch = 0 : i64, scratch_operands = 0 : i64, tpu.core_type = #tpu.core_type<tc>} {
    %c0 = arith.constant 0 : index
    %c0_0 = arith.constant 0 : index
    %0 = vector.load %arg0[%c0, %c0_0] : memref<32x40xf32, #tpu.memory_space<vmem>>, vector<32x40xf32>
    %c0_1 = arith.constant 0 : index
    %c0_2 = arith.constant 0 : index
    %1 = vector.load %arg1[%c0_1, %c0_2] : memref<40x96xf32, #tpu.memory_space<vmem>>, vector<40x96xf32>
    %cst = arith.constant dense<0.000000e+00> : vector<32x96xf32>
    %2 = tpu.matmul %0, %1, %cst {dimension_numbers = #tpu.dot_dimension_numbers<[1], [0], [0], [1], [0, 0, 1, 1], [], []>} : vector<32x40xf32>, vector<40x96xf32>, vector<32x96xf32> -> vector<32x96xf32>
    %cst_3 = arith.constant dense<0.000000e+00> : vector<32xf32>
    %3 = vector.multi_reduction <add>, %2, %cst_3 [1] : vector<32x96xf32> to vector<32xf32>
    %4 = vector.shape_cast %3 : vector<32xf32> to vector<32x1xf32>
    %cst_4 = arith.constant 9.600000e+01 : f32
    %5 = vector.broadcast %cst_4 : f32 to vector<32x1xf32>
    %6 = arith.divf %4, %5 : vector<32x1xf32>
    %7 = vector.broadcast %6 : vector<32x1xf32> to vector<32x96xf32>
    %8 = arith.subf %2, %7 : vector<32x96xf32>
    %9 = arith.mulf %8, %8 : vector<32x96xf32>
    %cst_5 = arith.constant dense<0.000000e+00> : vector<32xf32>
    %10 = vector.multi_reduction <add>, %9, %cst_5 [1] : vector<32x96xf32> to vector<32xf32>
    %11 = vector.shape_cast %10 : vector<32xf32> to vector<32x1xf32>
    %cst_6 = arith.constant 9.600000e+01 : f32
    %12 = vector.broadcast %cst_6 : f32 to vector<32x1xf32>
    %13 = arith.divf %11, %12 : vector<32x1xf32>
    %14 = vector.broadcast %6 : vector<32x1xf32> to vector<32x96xf32>
    %15 = arith.subf %2, %14 : vector<32x96xf32>
    %cst_7 = arith.constant 9.99999974E-6 : f32
    %16 = vector.broadcast %cst_7 : f32 to vector<32x1xf32>
    %17 = arith.addf %13, %16 : vector<32x1xf32>
    %18 = math.rsqrt %17 : vector<32x1xf32>
    %19 = vector.broadcast %18 : vector<32x1xf32> to vector<32x96xf32>
    %20 = arith.mulf %15, %19 : vector<32x96xf32>
    %c31_i32 = arith.constant 31 : i32
    %21 = tpu.dynamic_rotate %20 by %c31_i32 dim 0 : vector<32x96xf32>, i32 -> vector<32x96xf32>
    %c30_i32 = arith.constant 30 : i32
    %22 = tpu.dynamic_rotate %20 by %c30_i32 dim 0 : vector<32x96xf32>, i32 -> vector<32x96xf32>
    %23 = tpu.iota {dimensions = array<i32: 1>} : vector<32x96xi32>
    %c32_i32 = arith.constant 32 : i32
    %24 = vector.broadcast %c32_i32 : i32 to vector<32x96xi32>
    %25 = arith.cmpi slt, %23, %24 : vector<32x96xi32>
    %c64_i32 = arith.constant 64 : i32
    %26 = vector.broadcast %c64_i32 : i32 to vector<32x96xi32>
    %27 = arith.cmpi slt, %23, %26 : vector<32x96xi32>
    %28 = arith.select %27, %21, %22 : vector<32x96xi1>, vector<32x96xf32>
    %29 = arith.select %25, %20, %28 : vector<32x96xi1>, vector<32x96xf32>
    %c0_8 = arith.constant 0 : index
    %c0_9 = arith.constant 0 : index
    %30 = vector.load %arg2[%c0_8, %c0_9] : memref<97x256xf32, #tpu.memory_space<vmem>>, vector<96x256xf32>
    %cst_10 = arith.constant dense<0.000000e+00> : vector<32x256xf32>
    %31 = tpu.matmul %29, %30, %cst_10 {dimension_numbers = #tpu.dot_dimension_numbers<[1], [0], [0], [1], [0, 0, 1, 1], [], []>} : vector<32x96xf32>, vector<96x256xf32>, vector<32x256xf32> -> vector<32x256xf32>
    %c96 = arith.constant 96 : index
    %c0_11 = arith.constant 0 : index
    %32 = vector.load %arg2[%c96, %c0_11] : memref<97x256xf32, #tpu.memory_space<vmem>>, vector<1x256xf32>
    %33 = vector.broadcast %32 : vector<1x256xf32> to vector<32x256xf32>
    %34 = arith.addf %31, %33 : vector<32x256xf32>
    %cst_12 = arith.constant 0.000000e+00 : f32
    %35 = vector.broadcast %cst_12 : f32 to vector<32x256xf32>
    %36 = arith.cmpf ogt, %34, %35 : vector<32x256xf32>
    %cst_13 = arith.constant 1.000000e-01 : f32
    %37 = vector.broadcast %cst_13 : f32 to vector<32x256xf32>
    %38 = arith.mulf %37, %34 : vector<32x256xf32>
    %39 = arith.select %36, %34, %38 : vector<32x256xi1>, vector<32x256xf32>
    %c31_i32_14 = arith.constant 31 : i32
    %40 = tpu.dynamic_rotate %39 by %c31_i32_14 dim 0 : vector<32x256xf32>, i32 -> vector<32x256xf32>
    %41 = arith.maximumf %39, %40 : vector<32x256xf32>
    %42 = tpu.iota {dimensions = array<i32: 0>} : vector<8x32xi32>
    %43 = tpu.iota {dimensions = array<i32: 1>} : vector<8x32xi32>
    %c16_i32 = arith.constant 16 : i32
    %44 = vector.broadcast %c16_i32 : i32 to vector<8x32xi32>
    %45 = arith.muli %42, %44 : vector<8x32xi32>
    %46 = arith.cmpi sge, %43, %45 : vector<8x32xi32>
    %c16_i32_15 = arith.constant 16 : i32
    %47 = vector.broadcast %c16_i32_15 : i32 to vector<8x32xi32>
    %48 = arith.muli %42, %47 : vector<8x32xi32>
    %c14_i32 = arith.constant 14 : i32
    %49 = vector.broadcast %c14_i32 : i32 to vector<8x32xi32>
    %50 = arith.addi %48, %49 : vector<8x32xi32>
    %51 = arith.cmpi slt, %43, %50 : vector<8x32xi32>
    %52 = arith.andi %46, %51 : vector<8x32xi1>
    %c2_i32 = arith.constant 2 : i32
    %c0_i32 = arith.constant 0 : i32
    %53 = arith.cmpi eq, %c2_i32, %c0_i32 : i32
    %c1_i32 = arith.constant 1 : i32
    %54 = arith.select %53, %c1_i32, %c2_i32 : i32
    %55 = vector.broadcast %54 : i32 to vector<8x32xi32>
    %56 = arith.remsi %43, %55 : vector<8x32xi32>
    %c0_i32_16 = arith.constant 0 : i32
    %57 = vector.broadcast %c0_i32_16 : i32 to vector<8x32xi32>
    %58 = arith.cmpi ne, %56, %57 : vector<8x32xi32>
    %c0_i32_17 = arith.constant 0 : i32
    %59 = vector.broadcast %c0_i32_17 : i32 to vector<8x32xi32>
    %60 = arith.cmpi slt, %56, %59 : vector<8x32xi32>
    %c0_i32_18 = arith.constant 0 : i32
    %61 = arith.cmpi slt, %54, %c0_i32_18 : i32
    %62 = vector.broadcast %61 : i1 to vector<8x32xi1>
    %63 = vector.broadcast %62 : vector<8x32xi1> to vector<8x32xi1>
    %64 = arith.xori %60, %63 : vector<8x32xi1>
    %65 = arith.andi %64, %58 : vector<8x32xi1>
    %66 = vector.broadcast %54 : i32 to vector<8x32xi32>
    %67 = arith.addi %56, %66 : vector<8x32xi32>
    %68 = arith.select %65, %67, %56 : vector<8x32xi1>, vector<8x32xi32>
    %c0_i32_19 = arith.constant 0 : i32
    %69 = vector.broadcast %c0_i32_19 : i32 to vector<8x32xi32>
    %70 = arith.cmpi eq, %68, %69 : vector<8x32xi32>
    %71 = arith.andi %52, %70 : vector<8x32xi1>
    %72 = arith.extui %71 : vector<8x32xi1> to vector<8x32xi32>
    %73 = arith.sitofp %72 : vector<8x32xi32> to vector<8x32xf32>
    %cst_20 = arith.constant dense<0.000000e+00> : vector<8x256xf32>
    %74 = tpu.matmul %73, %41, %cst_20 {dimension_numbers = #tpu.dot_dimension_numbers<[1], [0], [0], [1], [0, 0, 1, 1], [], []>} : vector<8x32xf32>, vector<32x256xf32>, vector<8x256xf32> -> vector<8x256xf32>
    %c0_21 = arith.constant 0 : index
    %c0_22 = arith.constant 0 : index
    %75 = vector.load %arg3[%c0_21, %c0_22] : memref<257x32xf32, #tpu.memory_space<vmem>>, vector<256x32xf32>
    %cst_23 = arith.constant dense<0.000000e+00> : vector<8x32xf32>
    %76 = tpu.matmul %74, %75, %cst_23 {dimension_numbers = #tpu.dot_dimension_numbers<[1], [0], [0], [1], [0, 0, 1, 1], [], []>} : vector<8x256xf32>, vector<256x32xf32>, vector<8x32xf32> -> vector<8x32xf32>
    %c256 = arith.constant 256 : index
    %c0_24 = arith.constant 0 : index
    %77 = vector.load %arg3[%c256, %c0_24] : memref<257x32xf32, #tpu.memory_space<vmem>>, vector<1x32xf32>
    %78 = vector.broadcast %77 : vector<1x32xf32> to vector<8x32xf32>
    %79 = arith.addf %76, %78 : vector<8x32xf32>
    %cst_25 = arith.constant 0.000000e+00 : f32
    %80 = vector.broadcast %cst_25 : f32 to vector<8x32xf32>
    %81 = arith.cmpf ogt, %79, %80 : vector<8x32xf32>
    %cst_26 = arith.constant 1.000000e-01 : f32
    %82 = vector.broadcast %cst_26 : f32 to vector<8x32xf32>
    %83 = arith.mulf %82, %79 : vector<8x32xf32>
    %84 = arith.select %81, %79, %83 : vector<8x32xi1>, vector<8x32xf32>
    %c0_27 = arith.constant 0 : index
    %c0_28 = arith.constant 0 : index
    %85 = vector.load %arg4[%c0_27, %c0_28] : memref<33x128xf32, #tpu.memory_space<vmem>>, vector<32x128xf32>
    %cst_29 = arith.constant dense<0.000000e+00> : vector<8x128xf32>
    %86 = tpu.matmul %84, %85, %cst_29 {dimension_numbers = #tpu.dot_dimension_numbers<[1], [0], [0], [1], [0, 0, 1, 1], [], []>} : vector<8x32xf32>, vector<32x128xf32>, vector<8x128xf32> -> vector<8x128xf32>
    %c32 = arith.constant 32 : index
    %c0_30 = arith.constant 0 : index
    %87 = vector.load %arg4[%c32, %c0_30] : memref<33x128xf32, #tpu.memory_space<vmem>>, vector<1x128xf32>
    %88 = vector.broadcast %87 : vector<1x128xf32> to vector<8x128xf32>
    %89 = arith.addf %86, %88 : vector<8x128xf32>
    %90 = tpu.iota {dimensions = array<i32: 1>} : vector<8x128xi32>
    %c2_i32_31 = arith.constant 2 : i32
    %91 = vector.broadcast %c2_i32_31 : i32 to vector<8x128xi32>
    %92 = arith.cmpi slt, %90, %91 : vector<8x128xi32>
    %93 = arith.negf %89 : vector<8x128xf32>
    %94 = math.exp %93 : vector<8x128xf32>
    %cst_32 = arith.constant 1.000000e+00 : f32
    %95 = vector.broadcast %cst_32 : f32 to vector<8x128xf32>
    %96 = arith.addf %95, %94 : vector<8x128xf32>
    %97 = arith.divf %95, %96 : vector<8x128xf32>
    %98 = arith.select %92, %97, %89 : vector<8x128xi1>, vector<8x128xf32>
    %c0_33 = arith.constant 0 : index
    %c0_34 = arith.constant 0 : index
    %99 = vector.load %arg5[%c0_33, %c0_34] : memref<8x128xf32, #tpu.memory_space<vmem>>, vector<8x128xf32>
    tpu.vector_store %arg5[%c0_33, %c0_34], %98 {strides = array<i32>} : memref<8x128xf32, #tpu.memory_space<vmem>>, vector<8x128xf32>,
    return
  }
}

</mosaic_0001>

<bundles_post_ra>
// kernel: eq.1
= control target key start
LH: loop header
LB: loop body
LE: loop exit
PB: predicated region body
PF: predicated region fallthrough
CT: control target
= control target key end

     0   :  { %vm7_vm0 = vcmask 130048   ;;  %vm13_vm1 = vcmask 261248   ;;  %s39_s0 = inlined_call_operand.vmem [shape: s32[2,16], index: 0, kind: input, shape index: {}]   ;;  %s40_s1 = inlined_call_operand.vmem [shape: s32[32], index: 1, kind: output, shape index: {}]  }
   0x1   :  { %v4_v0 = vld [vmem:[%s39_s0] sm:$0x3]  ;;  %s22_s0 = smov 16  }
   0x2   :  { %5 = vst [vmem:[#allocation1] sm:$0x3] %v4_v0 }
   0x9   :  { %v10_v1 = vld [vmem:[#allocation1 + $0x1] sm:$0x1]   ;;  %v6_v2 = vld [vmem:[#allocation1] sm:$0x1]  }
   0xa   :  { %11 = vrot.lane.b32.xlu0 %v10_v1, %s22_s0  ;;  %8 = vst.msk [vmem:[#allocation0] sm:$0x1] %vm7_vm0, %v6_v2  }
  0x7c   :  { %v12_v3 = vpop.permute.xlu0 %11  }
  0x7d   :  { %14 = vst.msk [vmem:[#allocation0] sm:$0x1] %vm13_vm1, %v12_v3  }
  0x84   :  { %v17_v4 = vld [vmem:[#allocation0] sm:$0x1] }
  0x85   :  { %20 = vst [vmem:[%s40_s1] sm:$0x1] %v17_v4 }

// kernel: adapt_emb_cnn.1
= control target key start
LH: loop header
LB: loop body
LE: loop exit
PB: predicated region body
PF: predicated region fallthrough
CT: control target
= control target key end

     0   :  { %vm29_vm0 = vcmask 326656   ;;  %vm71_vm1 = vcmask 785408   ;;  %v581_v17 = vmov 96.0   ;;  %s970_s1 = inlined_call_operand.vmem [shape: f32[40,96], index: 1, kind: input, shape index: {}]   ;;  %s971_s0 = inlined_call_operand.vmem [shape: f32[32,40], index: 0, kind: input, shape index: {}]   ;;  %s972_s2 = inlined_call_operand.vmem [shape: f32[97,256], index: 2, kind: input, shape index: {}]   ;;  %s973_s3 = inlined_call_operand.vmem [shape: f32[257,32], index: 3, kind: input, shape index: {}]   ;;  %s974_s4 = inlined_call_operand.vmem [shape: f32[33,128], index: 4, kind: input, shape index: {}]   ;;  %s975_s5 = inlined_call_operand.vmem [shape: f32[8,128], index: 5, kind: output, shape index: {}]  }
   0x1   :  { %v28_v0 = vld [vmem:[%s970_s1 + $0x20] sm:$0xff]  ;;  %v27_v1 = vld [vmem:[%s970_s1 + $0x18] sm:$0xff]  ;;  %v26_v2 = vld [vmem:[%s970_s1 + $0x10] sm:$0xff]  ;;  %567 = vrcp.f32 %v581_v17 }
   0x2   :  { %53 = vmatpush.msra.mxu0 %v28_v0  ;;  %v25_v3 = vld [vmem:[%s970_s1 + $0x8] sm:$0xff]  ;;  %v24_v4 = vld [vmem:[%s970_s1] sm:$0xff]  ;;  %v22_v7 = vld [vmem:[%s971_s0 + $0x10] sm:$0xff] }
   0x3   :  { %v20_v5 = vld [vmem:[%s971_s0] sm:$0xff]  ;;  %v21_v6 = vld [vmem:[%s971_s0 + $0x8] sm:$0xff]  ;;  %v23_v8 = vld [vmem:[%s971_s0 + $0x18] sm:$0xff] }
   0x4   :  { %54 = vmatpush.msra.mxu0 %v27_v1  ;;  %v221_v44 = vld [vmem:[%s972_s2 + $0xb0] sm:$0xff]  ;;  %v222_v45 = vld [vmem:[%s972_s2 + $0xb8] sm:$0xff]  ;;  %v219_v46 = vld [vmem:[%s972_s2 + $0xa0] sm:$0xff] }
   0x5   :  { %246 = vmatpush.msra.mxu1 %v221_v44  ;;  %275 = vmatpush.msra.mxu2 %v222_v45  ;;  %v220_v47 = vld [vmem:[%s972_s2 + $0xa8] sm:$0xff]  ;;  %v217_v48 = vld [vmem:[%s972_s2 + $0x90] sm:$0xff]  ;;  %v218_v49 = vld [vmem:[%s972_s2 + $0x98] sm:$0xff] }
   0x6   :  { %55 = vmatpush.msra.mxu0 %v26_v2  ;;  %v215_v50 = vld [vmem:[%s972_s2 + $0x80] sm:$0xff]  ;;  %v216_v51 = vld [vmem:[%s972_s2 + $0x88] sm:$0xff]  ;;  %v213_v52 = vld [vmem:[%s972_s2 + $0x70] sm:$0xff] }
   0x7   :  { %v568_v18 = vpop.eup %567  ;;  %247 = vmatpush.msra.mxu1 %v219_v46  ;;  %276 = vmatpush.msra.mxu2 %v220_v47  ;;  %v214_v53 = vld [vmem:[%s972_s2 + $0x78] sm:$0xff]  ;;  %v211_v54 = vld [vmem:[%s972_s2 + $0x60] sm:$0xff]  ;;  %v212_v55 = vld [vmem:[%s972_s2 + $0x68] sm:$0xff] }
   0x8   :  { %56 = vmatpush.msra.mxu0 %v25_v3  ;;  %v85_v19 = vmul.f32 96.0, %v568_v18  ;;  %vm89_vm2 = vweird.f32 %v568_v18  ;;  %v209_v56 = vld [vmem:[%s972_s2 + $0x50] sm:$0xff]  ;;  %v210_v57 = vld [vmem:[%s972_s2 + $0x58] sm:$0xff]  ;;  %v207_v58 = vld [vmem:[%s972_s2 + $0x40] sm:$0xff] }
   0x9   :  { %248 = vmatpush.msra.mxu1 %v217_v48  ;;  %277 = vmatpush.msra.mxu2 %v218_v49  ;;  %v208_v59 = vld [vmem:[%s972_s2 + $0x48] sm:$0xff]  ;;  %v205_v60 = vld [vmem:[%s972_s2 + $0x30] sm:$0xff]  ;;  %v206_v61 = vld [vmem:[%s972_s2 + $0x38] sm:$0xff] }
   0xa   :  { %57 = vmatpush.msra.mxu0 %v24_v4  ;;  %v86_v20 = vsub.f32 1.0, %v85_v19  ;;  %v203_v63 = vld [vmem:[%s972_s2 + $0x20] sm:$0xff]  ;;  %v204_v0 = vld [vmem:[%s972_s2 + $0x28] sm:$0xff]  ;;  %v201_v2 = vld [vmem:[%s972_s2 + $0x10] sm:$0xff] }
   0xb   :  { %545 = vmatmul.msk.f32.vlgmr.msra.gmra.mxu0 %vm29_vm0, %v20_v5  ;;  %249 = vmatpush.msra.mxu1 %v215_v50  ;;  %v202_v3 = vld [vmem:[%s972_s2 + $0x18] sm:$0xff]  ;;  %v199_v5 = vld [vmem:[%s972_s2] sm:$0xff] }
   0xc   :  { %v87_v21 = vmul.f32 %v568_v18, %v86_v20  ;;  %278 = vmatpush.msra.mxu2 %v216_v51 }
   0xd   :  { %250 = vmatpush.msra.mxu1 %v213_v52 }
   0xe   :  { %v88_v22 = vadd.f32 %v568_v18, %v87_v21  ;;  %279 = vmatpush.msra.mxu2 %v214_v53 }
   0xf   :  { %251 = vmatpush.msra.mxu1 %v211_v54 }
  0x10   :  { %v644_v23 = vsel %vm89_vm2, %v568_v18, %v88_v22  ;;  %280 = vmatpush.msra.mxu2 %v212_v55  ;;  %v171_v22 = vlaneseq }
  0x11   :  { %252 = vmatpush.msra.mxu1 %v209_v56 }
  0x12   :  { %281 = vmatpush.msra.mxu2 %v210_v57 }
  0x13   :  { %546 = vmatmul.msk.f32.gmra.mxu0 %vm29_vm0, %v21_v6  ;;  %253 = vmatpush.msra.mxu1 %v207_v58  ;;  %v200_v6 = vld [vmem:[%s972_s2 + $0x8] sm:$0xff] }
  0x14   :  { %282 = vmatpush.msra.mxu2 %v208_v59 }
  0x15   :  { %254 = vmatpush.msra.mxu1 %v205_v60 }
  0x16   :  { %283 = vmatpush.msra.mxu2 %v206_v61 }
  0x17   :  { %255 = vmatpush.msra.mxu1 %v203_v63 }
  0x18   :  { %284 = vmatpush.msra.mxu2 %v204_v0 }
  0x19   :  { %256 = vmatpush.msra.mxu1 %v201_v2 }
  0x1a   :  { %285 = vmatpush.msra.mxu2 %v202_v3 }
  0x1b   :  { %547 = vmatmul.msk.f32.gmra.mxu0 %vm29_vm0, %v22_v7  ;;  %257 = vmatpush.msra.mxu1 %v199_v5 }
  0x1c   :  { %286 = vmatpush.msra.mxu2 %v200_v6 }
  0x23   :  { %548 = vmatmul.msk.f32.gmra.mxu0 %vm29_vm0, %v23_v8 }
  0x88   :  { %v59_v9 = vpop.f32.mrf.mxu0 }
  0x89   :  { %v72_v10 = vsel %vm71_vm1, %v59_v9, 0.0 }
  0x8a   :  { %73 = vadd.xlane.f32.xlu0 %v72_v10 }
  0x90   :  { %v62_v11 = vpop.f32.mrf.mxu0 }
  0x91   :  { %v75_v12 = vsel %vm71_vm1, %v62_v11, 0.0 }
  0x92   :  { %76 = vadd.xlane.f32.xlu0 %v75_v12 }
  0x98   :  { %v65_v13 = vpop.f32.mrf.mxu0 }
  0x99   :  { %v78_v14 = vsel %vm71_vm1, %v65_v13, 0.0 }
  0x9a   :  { %79 = vadd.xlane.f32.xlu1 %v78_v14 }
  0xa0   :  { %v68_v15 = vpop.f32.mrf.mxu0 }
  0xa1   :  { %v81_v16 = vsel %vm71_vm1, %v68_v15, 0.0 }
  0xa2   :  { %82 = vadd.xlane.f32.xlu1 %v81_v16 }
  0xfd   :  { %v74_v24 = vpop.xlane.xlu0 %73 }
  0xfe   :  { %v91_v25 = vmul.f32 %v644_v23, %v74_v24 }
 0x100   :  { %v647_v26 = vsub.f32 %v59_v9, %v91_v25 }
 0x102   :  { %v99_v27 = vmul.f32 %v647_v26, %v647_v26 }
 0x104   :  { %v103_v28 = vsel %vm71_vm1, %v99_v27, 0.0 }
 0x105   :  { %104 = vadd.xlane.f32.xlu2 %v103_v28  ;;  %v77_v29 = vpop.xlane.xlu0 %76 }
 0x106   :  { %v92_v30 = vmul.f32 %v644_v23, %v77_v29 }
 0x108   :  { %v653_v31 = vsub.f32 %v62_v11, %v92_v30 }
 0x10a   :  { %v100_v32 = vmul.f32 %v653_v31, %v653_v31 }
 0x10c   :  { %v106_v33 = vsel %vm71_vm1, %v100_v32, 0.0 }
 0x10d   :  { %107 = vadd.xlane.f32.xlu2 %v106_v33  ;;  %v80_v34 = vpop.xlane.xlu1 %79  ;;  %v746_v33 = vshrl.u32 %v171_v22, 7 }
 0x10e   :  { %v93_v35 = vmul.f32 %v644_v23, %v80_v34 }
 0x10f   :  { %vm173_vm9 = vcmp.lt.s32.totalorder %v746_v33, 7  ;;  %vm182_vm10 = vcmp.lt.s32.totalorder %v746_v33, 6 }
 0x110   :  { %v659_v36 = vsub.f32 %v65_v13, %v93_v35 }
 0x112   :  { %v101_v37 = vmul.f32 %v659_v36, %v659_v36 }
 0x114   :  { %v109_v38 = vsel %vm71_vm1, %v101_v37, 0.0  ;;  %v748_v37 = vand.u32 127, %v171_v22 }
 0x115   :  { %110 = vadd.xlane.f32.xlu0 %v109_v38  ;;  %v83_v39 = vpop.xlane.xlu1 %82 }
 0x116   :  { %v94_v40 = vmul.f32 %v644_v23, %v83_v39  ;;  %vm190_vm11 = vcmp.lt.s32.totalorder %v748_v37, 64  ;;  %vm189_vm13 = vcmp.lt.s32.totalorder %v748_v37, 32 }
 0x118   :  { %v665_v41 = vsub.f32 %v68_v15, %v94_v40 }
 0x11a   :  { %v102_v42 = vmul.f32 %v665_v41, %v665_v41 }
 0x11c   :  { %v112_v43 = vsel %vm71_vm1, %v102_v42, 0.0 }
 0x11d   :  { %113 = vadd.xlane.f32.xlu1 %v112_v43 }
 0x178   :  { %v105_v62 = vpop.xlane.xlu2 %104 }
 0x179   :  { %v115_v1 = vmul.f32 %v105_v62, %v644_v23 }
 0x17b   :  { %v119_v4 = vadd.f32 1e-05, %v115_v1 }
 0x17d   :  { %569 = vrsqrt.f32 %v119_v4  ;;  %vm129_vm4 = vweird.f32 %v119_v4 }
 0x180   :  { %v108_v7 = vpop.xlane.xlu2 %107 }
 0x181   :  { %v116_v8 = vmul.f32 %v108_v7, %v644_v23 }
 0x183   :  { %v570_v9 = vpop.eup %569  ;;  %v120_v10 = vadd.f32 1e-05, %v116_v8 }
 0x184   :  { %v124_v11 = vmul.f32 %v570_v9, %v119_v4  ;;  %vm130_vm3 = vweird.f32 %v570_v9 }
 0x185   :  { %571 = vrsqrt.f32 %v120_v10  ;;  %vm131_vm5 = vmor %vm129_vm4, %vm130_vm3  ;;  %vm139_vm7 = vweird.f32 %v120_v10 }
 0x186   :  { %v125_v12 = vmul.f32 %v570_v9, %v124_v11 }
 0x188   :  { %v126_v13 = vmul.f32 0.5, %v125_v12  ;;  %v111_v14 = vpop.xlane.xlu0 %110 }
 0x189   :  { %v117_v15 = vmul.f32 %v111_v14, %v644_v23  ;;  %v549_v14 = vld [vmem:[%s972_s2 + $0xc0] ss:$8 sm:$0x3] }
 0x18a   :  { %v127_v16 = vsub.f32 1.5, %v126_v13 }
 0x18b   :  { %v572_v17 = vpop.eup %571  ;;  %v121_v18 = vadd.f32 1e-05, %v117_v15  ;;  %v226_v15 = vperm.slane %v549_v14, 0 }
 0x18c   :  { %v134_v19 = vmul.f32 %v572_v17, %v120_v10  ;;  %v128_v20 = vmul.f32 %v570_v9, %v127_v16  ;;  %vm140_vm6 = vweird.f32 %v572_v17 }
 0x18d   :  { %573 = vrsqrt.f32 %v121_v18  ;;  %vm141_vm8 = vmor %vm139_vm7, %vm140_vm6  ;;  %vm149_vm14 = vweird.f32 %v121_v18 }
 0x18e   :  { %v135_v21 = vmul.f32 %v572_v17, %v134_v19  ;;  %v132_v29 = vsel %vm131_vm5, %v570_v9, %v128_v20  ;;  %v227_v19 = vperm.slane %v549_v14, 1  ;;  %v428_v20 = vld [vmem:[%s973_s3 + $0x78] sm:$0xff] }
 0x18f   :  { %v163_v38 = vmul.f32 %v132_v29, %v647_v26  ;;  %447 = vmatpush.msrb.mxu0 %v428_v20 }
 0x190   :  { %v136_v24 = vmul.f32 0.5, %v135_v21  ;;  %v114_v25 = vpop.xlane.xlu1 %113  ;;  %v427_v21 = vld [vmem:[%s973_s3 + $0x70] sm:$0xff] }
 0x191   :  { %v118_v27 = vmul.f32 %v114_v25, %v644_v23  ;;  %v167_v43 = vrot.slane %v163_v38, 1  ;;  %v178_v45 = vrot.slane %v163_v38, 2  ;;  %448 = vmatpush.msrb.mxu0 %v427_v21 }
 0x192   :  { %v137_v28 = vsub.f32 1.5, %v136_v24  ;;  %v426_v24 = vld [vmem:[%s973_s3 + $0x68] sm:$0xff] }
 0x193   :  { %v574_v30 = vpop.eup %573  ;;  %v122_v32 = vadd.f32 1e-05, %v118_v27  ;;  %v348_v27 = vmul.u32 16, %v746_v33  ;;  %449 = vmatpush.msrb.mxu0 %v426_v24  ;;  %v416_v24 = vld [vmem:[%s973_s3 + $0x18] sm:$0xff]  ;;  %v443_v33 = vld [vmem:[%s973_s3 + $0xf0] sm:$0xff] }
 0x194   :  { %v138_v34 = vmul.f32 %v572_v17, %v137_v28  ;;  %v144_v35 = vmul.f32 %v574_v30, %v121_v18  ;;  %vm150_vm12 = vweird.f32 %v574_v30 }
 0x195   :  { %575 = vrsqrt.f32 %v122_v32  ;;  %vm151_vm15 = vmor %vm149_vm14, %vm150_vm12  ;;  %vm159_vm2 = vweird.f32 %v122_v32 }
 0x196   :  { %v142_v39 = vsel %vm141_vm8, %v572_v17, %v138_v34  ;;  %v145_v40 = vmul.f32 %v574_v30, %v144_v35  ;;  %vm828_vm8 = vcmp.ge.s32.totalorder %v748_v37, %v348_v27 }
 0x197   :  { %v164_v23 = vmul.f32 %v142_v39, %v653_v31 }
 0x198   :  { %v146_v42 = vmul.f32 0.5, %v145_v40 }
 0x199   :  { %v168_v44 = vrot.slane %v164_v23, 1  ;;  %v179_v46 = vrot.slane %v164_v23, 2 }
 0x19a   :  { %v147_v47 = vsub.f32 1.5, %v146_v42 }
 0x19b   :  { %v576_v26 = vpop.eup %575  ;;  %v176_v48 = vsel %vm173_vm9, %v167_v43, %v168_v44  ;;  %v185_v31 = vsel %vm182_vm10, %v178_v45, %v179_v46 }
 0x19c   :  { %v148_v49 = vmul.f32 %v574_v30, %v147_v47  ;;  %v154_v50 = vmul.f32 %v576_v26, %v122_v32  ;;  %v191_v51 = vsel %vm190_vm11, %v176_v48, %v185_v31  ;;  %vm160_vm0 = vweird.f32 %v576_v26  ;;  %v425_v32 = vld [vmem:[%s973_s3 + $0x60] sm:$0xff]  ;;  %v422_v48 = vld [vmem:[%s973_s3 + $0x48] sm:$0xff] }
 0x19d   :  { %v195_v52 = vsel %vm189_vm13, %v163_v38, %v191_v51  ;;  %vm161_vm3 = vmor %vm159_vm2, %vm160_vm0  ;;  %v424_v38 = vld [vmem:[%s973_s3 + $0x58] sm:$0xff]  ;;  %450 = vmatpush.msrb.mxu0 %v425_v32  ;;  %vm369_vm2 = vcmask 261120  }
 0x19e   :  { %v152_v53 = vsel %vm151_vm15, %v574_v30, %v148_v49  ;;  %v155_v54 = vmul.f32 %v576_v26, %v154_v50  ;;  %550 = vmatmul.msk.f32.vlgmr.msra.gmra.mxu1 %vm71_vm1, %v195_v52  ;;  %554 = vmatmul.msk.f32.vlgmr.msra.gmra.mxu2 %vm71_vm1, %v195_v52 }
 0x19f   :  { %v165_v55 = vmul.f32 %v152_v53, %v659_v36  ;;  %451 = vmatpush.msrb.mxu0 %v424_v38  ;;  %v442_v38 = vld [vmem:[%s973_s3 + $0xe8] sm:$0xff] }
 0x1a0   :  { %v156_v56 = vmul.f32 0.5, %v155_v54 }
 0x1a1   :  { %v169_v57 = vrot.slane %v165_v55, 1  ;;  %v180_v58 = vrot.slane %v165_v55, 2 }
 0x1a2   :  { %v157_v59 = vsub.f32 1.5, %v156_v56  ;;  %v421_v56 = vld [vmem:[%s973_s3 + $0x40] sm:$0xff] }
 0x1a3   :  { %v175_v60 = vsel %vm173_vm9, %v168_v44, %v169_v57  ;;  %v184_v61 = vsel %vm182_vm10, %v179_v46, %v180_v58  ;;  %v357_v44 = vand.u32 1, %v748_v37 }
 0x1a4   :  { %v158_v62 = vmul.f32 %v576_v26, %v157_v59  ;;  %v192_v63 = vsel %vm190_vm11, %v175_v60, %v184_v61 }
 0x1a5   :  { %v196_v36 = vsel %vm189_vm13, %v164_v23, %v192_v63  ;;  %v350_v23 = vadd.s32 14, %v348_v27  ;;  %v415_v27 = vld [vmem:[%s973_s3 + $0x10] sm:$0xff] }
 0x1a6   :  { %v162_v0 = vsel %vm161_vm3, %v576_v26, %v158_v62  ;;  %551 = vmatmul.msk.f32.gmra.mxu1 %vm71_vm1, %v196_v36  ;;  %555 = vmatmul.msk.f32.gmra.mxu2 %vm71_vm1, %v196_v36  ;;  %v420_v36 = vld [vmem:[%s973_s3 + $0x38] sm:$0xff] }
 0x1a7   :  { %v166_v1 = vmul.f32 %v162_v0, %v665_v41 }
 0x1a9   :  { %v170_v2 = vrot.slane %v166_v1, 1  ;;  %v181_v3 = vrot.slane %v166_v1, 2 }
 0x1ab   :  { %v174_v4 = vsel %vm173_vm9, %v169_v57, %v170_v2  ;;  %v183_v5 = vsel %vm182_vm10, %v180_v58, %v181_v3  ;;  %v177_v41 = vsel %vm173_vm9, %v170_v2, %v167_v43  ;;  %v186_v8 = vsel %vm182_vm10, %v181_v3, %v178_v45  ;;  %v423_v45 = vld [vmem:[%s973_s3 + $0x50] sm:$0xff] }
 0x1ac   :  { %v193_v6 = vsel %vm190_vm11, %v174_v4, %v183_v5  ;;  %v194_v9 = vsel %vm190_vm11, %v177_v41, %v186_v8  ;;  %452 = vmatpush.msrb.mxu0 %v423_v45  ;;  %vm351_vm10 = vcmp.lt.s32.totalorder %v748_v37, %v350_v23  ;;  %vm838_vm11 = vcmp.eq.s32.totalorder %v357_v44, 0  ;;  %v419_v5 = vld [vmem:[%s973_s3 + $0x30] sm:$0xff]  ;;  %v436_v44 = vld [vmem:[%s973_s3 + $0xb8] sm:$0xff] }
 0x1ad   :  { %v197_v7 = vsel %vm189_vm13, %v165_v55, %v193_v6  ;;  %v198_v10 = vsel %vm189_vm13, %v166_v1, %v194_v9  ;;  %vm853_vm13 = vmand %vm828_vm8, %vm351_vm10  ;;  %v439_v23 = vld [vmem:[%s973_s3 + $0xd0] sm:$0xff]  ;;  %v491_v55 = vld [vmem:[%s974_s4 + $0x8] sm:$0xff] }
 0x1ae   :  { %552 = vmatmul.msk.f32.gmra.mxu1 %vm71_vm1, %v197_v7  ;;  %556 = vmatmul.msk.f32.gmra.mxu2 %vm71_vm1, %v197_v7  ;;  %vm366_vm0 = vmand %vm853_vm13, %vm838_vm11  ;;  %v435_v45 = vld [vmem:[%s973_s3 + $0xb0] sm:$0xff] }
 0x1af   :  { %453 = vmatpush.msrb.mxu0 %v422_v48  ;;  %v432_v48 = vld [vmem:[%s973_s3 + $0x98] sm:$0xff] }
 0x1b1   :  { %454 = vmatpush.msrb.mxu0 %v421_v56  ;;  %v490_v56 = vld [vmem:[%s974_s4] sm:$0xff] }
 0x1b3   :  { %455 = vmatpush.msrb.mxu0 %v420_v36  ;;  %v566_v36 = vld [vmem:[%s974_s4 + $0x20] ss:$0 sm:$0xff] }
 0x1b5   :  { %456 = vmatpush.msrb.mxu0 %v419_v5 }
 0x1b6   :  { %553 = vmatmul.msk.f32.gmra.mxu1 %vm71_vm1, %v198_v10  ;;  %557 = vmatmul.msk.f32.gmra.mxu2 %vm71_vm1, %v198_v10 }
 0x21b   :  { %v259_v11 = vpop.f32.mrf.mxu1 }
 0x21c   :  { %v260_v18 = vadd.f32 %v259_v11, %v226_v15  ;;  %v418_v11 = vld [vmem:[%s973_s3 + $0x28] sm:$0xff] }
 0x21d   :  { %457 = vmatpush.msrb.mxu0 %v418_v11 }
 0x21e   :  { %v308_v28 = vmul.f32 0.1, %v260_v18  ;;  %vm300_vm1 = vcmp.gt.f32.partialorder %v260_v18, 0.0 }
 0x220   :  { %v817_v42 = vsel %vm300_vm1, %v260_v18, %v308_v28  ;;  %v582_v18 = vmov 0.0  }
 0x221   :  { %v288_v12 = vpop.f32.mrf.mxu2  ;;  %v324_v50 = vrot.slane %v817_v42, 1 }
 0x222   :  { %v289_v29 = vadd.f32 %v288_v12, %v227_v19 }
 0x223   :  { %v262_v13 = vpop.f32.mrf.mxu1 }
 0x224   :  { %v263_v25 = vadd.f32 %v262_v13, %v226_v15  ;;  %v309_v43 = vmul.f32 0.1, %v289_v29  ;;  %vm301_vm7 = vcmp.gt.f32.partialorder %v289_v29, 0.0 }
 0x226   :  { %v310_v39 = vmul.f32 0.1, %v263_v25  ;;  %vm302_vm5 = vcmp.gt.f32.partialorder %v263_v25, 0.0  ;;  %v836_v57 = vsel %vm301_vm7, %v289_v29, %v309_v43  ;;  %v437_v43 = vld [vmem:[%s973_s3 + $0xc0] sm:$0xff] }
 0x227   :  { %v325_v8 = vrot.slane %v836_v57, 1 }
 0x228   :  { %v318_v51 = vsel %vm302_vm5, %v263_v25, %v310_v39  ;;  %v441_v39 = vld [vmem:[%s973_s3 + $0xe0] sm:$0xff] }
 0x229   :  { %v291_v16 = vpop.f32.mrf.mxu2  ;;  %v326_v63 = vrot.slane %v318_v51, 1 }
 0x22a   :  { %v292_v31 = vadd.f32 %v291_v16, %v227_v19  ;;  %v417_v16 = vld [vmem:[%s973_s3 + $0x20] sm:$0xff] }
 0x22b   :  { %v265_v17 = vpop.f32.mrf.mxu1  ;;  %v336_v9 = vsel %vm173_vm9, %v324_v50, %v326_v63  ;;  %458 = vmatpush.msrb.mxu0 %v417_v16 }
 0x22c   :  { %v266_v22 = vadd.f32 %v265_v17, %v226_v15  ;;  %v311_v0 = vmul.f32 0.1, %v292_v31  ;;  %vm303_vm15 = vcmp.gt.f32.partialorder %v292_v31, 0.0  ;;  %v340_v17 = vmax.f32 %v817_v42, %v336_v9  ;;  %v438_v42 = vld [vmem:[%s973_s3 + $0xc8] sm:$0xff] }
 0x22d   :  { %459 = vmatpush.msrb.mxu0 %v416_v24 }
 0x22e   :  { %v312_v34 = vmul.f32 0.1, %v266_v22  ;;  %vm304_vm4 = vcmp.gt.f32.partialorder %v266_v22, 0.0  ;;  %v319_v13 = vsel %vm303_vm15, %v292_v31, %v311_v0  ;;  %v431_v31 = vld [vmem:[%s973_s3 + $0x90] sm:$0xff] }
 0x22f   :  { %460 = vmatpush.msrb.mxu0 %v415_v27 }
 0x230   :  { %v320_v26 = vsel %vm304_vm4, %v266_v22, %v312_v34  ;;  %v327_v22 = vrot.slane %v319_v13, 1  ;;  %vm519_vm4 = vcmp.lt.s32.totalorder %v748_v37, 2 }
 0x231   :  { %v294_v30 = vpop.f32.mrf.mxu2  ;;  %v328_v54 = vrot.slane %v320_v26, 1 }
 0x232   :  { %v295_v46 = vadd.f32 %v294_v30, %v227_v19  ;;  %v337_v29 = vsel %vm173_vm9, %v325_v8, %v327_v22  ;;  %v414_v30 = vld [vmem:[%s973_s3 + $0x8] sm:$0xff] }
 0x233   :  { %v268_v35 = vpop.f32.mrf.mxu1  ;;  %v334_v4 = vsel %vm173_vm9, %v326_v63, %v328_v54  ;;  %v341_v34 = vmax.f32 %v836_v57, %v337_v29  ;;  %461 = vmatpush.msrb.mxu0 %v414_v30  ;;  %v565_v57 = vld [vmem:[%s973_s3 + $0x100] ss:$0 sm:$0xff] }
 0x234   :  { %v269_v40 = vadd.f32 %v268_v35, %v226_v15  ;;  %v313_v58 = vmul.f32 0.1, %v295_v46  ;;  %vm305_vm12 = vcmp.gt.f32.partialorder %v295_v46, 0.0  ;;  %v342_v12 = vmax.f32 %v318_v51, %v334_v4  ;;  %v444_v35 = vld [vmem:[%s973_s3 + $0xf8] sm:$0xff] }
 0x236   :  { %v314_v47 = vmul.f32 0.1, %v269_v40  ;;  %vm306_vm6 = vcmp.gt.f32.partialorder %v269_v40, 0.0  ;;  %v321_v41 = vsel %vm305_vm12, %v295_v46, %v313_v58  ;;  %v434_v46 = vld [vmem:[%s973_s3 + $0xa8] sm:$0xff] }
 0x237   :  { %v329_v15 = vrot.slane %v321_v41, 1 }
 0x238   :  { %v322_v49 = vsel %vm306_vm6, %v269_v40, %v314_v47  ;;  %v440_v40 = vld [vmem:[%s973_s3 + $0xd8] sm:$0xff]  ;;  %v413_v47 = vld [vmem:[%s973_s3] sm:$0xff] }
 0x239   :  { %v297_v52 = vpop.f32.mrf.mxu2  ;;  %v330_v53 = vrot.slane %v322_v49, 1  ;;  %v335_v25 = vsel %vm173_vm9, %v327_v22, %v329_v15  ;;  %462 = vmatpush.msrb.mxu0 %v413_v47 }
 0x23a   :  { %v298_v59 = vadd.f32 %v297_v52, %v227_v19  ;;  %v558_v19 = vsel %vm366_vm0, 1.0, %v582_v18  ;;  %v343_v32 = vmax.f32 %v319_v13, %v335_v25 }
 0x23b   :  { %v338_v61 = vsel %vm173_vm9, %v330_v53, %v324_v50  ;;  %v332_v62 = vsel %vm173_vm9, %v328_v54, %v330_v53  ;;  %v429_v50 = vld [vmem:[%s973_s3 + $0x80] sm:$0xff]  ;;  %v493_v53 = vld [vmem:[%s974_s4 + $0x18] sm:$0xff]  ;;  %v492_v54 = vld [vmem:[%s974_s4 + $0x10] sm:$0xff] }
 0x23c   :  { %v315_v1 = vmul.f32 0.1, %v298_v59  ;;  %v346_v2 = vmax.f32 %v322_v49, %v338_v61  ;;  %vm307_vm14 = vcmp.gt.f32.partialorder %v298_v59, 0.0  ;;  %v344_v6 = vmax.f32 %v320_v26, %v332_v62  ;;  %v433_v26 = vld [vmem:[%s973_s3 + $0xa0] sm:$0xff]  ;;  %v430_v49 = vld [vmem:[%s973_s3 + $0x88] sm:$0xff]  ;;  %511 = vmatpush.msra.mxu0 %v493_v53 }
 0x23e   :  { %385 = vmatpush.msra.mxu3 %v346_v2  ;;  %v323_v7 = vsel %vm307_vm14, %v298_v59, %v315_v1  ;;  %512 = vmatpush.msra.mxu0 %v492_v54 }
 0x23f   :  { %v331_v10 = vrot.slane %v323_v7, 1 }
 0x240   :  { %386 = vmatpush.msra.mxu3 %v344_v6  ;;  %513 = vmatpush.msra.mxu0 %v491_v55 }
 0x241   :  { %v339_v14 = vsel %vm173_vm9, %v331_v10, %v325_v8  ;;  %v333_v21 = vsel %vm173_vm9, %v329_v15, %v331_v10 }
 0x242   :  { %387 = vmatpush.msra.mxu3 %v342_v12  ;;  %v347_v20 = vmax.f32 %v323_v7, %v339_v14  ;;  %v345_v28 = vmax.f32 %v321_v41, %v333_v21  ;;  %514 = vmatpush.msra.mxu0 %v490_v56 }
 0x244   :  { %388 = vmatpush.msra.mxu3 %v340_v17 }
 0x245   :  { %559 = vmatmul.msk.f32.vlgmr.msra.gmra.mxu3 %vm369_vm2, %v558_v19 }
 0x246   :  { %405 = vmatpush.msrb.mxu3 %v347_v20 }
 0x248   :  { %406 = vmatpush.msrb.mxu3 %v345_v28 }
 0x24a   :  { %407 = vmatpush.msrb.mxu3 %v343_v32 }
 0x24c   :  { %408 = vmatpush.msrb.mxu3 %v341_v34 }
 0x24d   :  { %560 = vmatmul.msk.f32.vlgmr.msrb.gmra.mxu3 %vm369_vm2, %v558_v19 }
 0x24e   :  { %467 = vmatpush.msra.mxu3 %v444_v35 }
 0x250   :  { %468 = vmatpush.msra.mxu3 %v443_v33 }
 0x252   :  { %469 = vmatpush.msra.mxu3 %v442_v38 }
 0x254   :  { %470 = vmatpush.msra.mxu3 %v441_v39 }
 0x256   :  { %471 = vmatpush.msra.mxu3 %v440_v40 }
 0x258   :  { %472 = vmatpush.msra.mxu3 %v439_v23 }
 0x25a   :  { %473 = vmatpush.msra.mxu3 %v438_v42 }
 0x25c   :  { %474 = vmatpush.msra.mxu3 %v437_v43 }
 0x25e   :  { %475 = vmatpush.msra.mxu3 %v436_v44 }
 0x260   :  { %476 = vmatpush.msra.mxu3 %v435_v45 }
 0x262   :  { %477 = vmatpush.msra.mxu3 %v434_v46 }
 0x264   :  { %478 = vmatpush.msra.mxu3 %v433_v26 }
 0x266   :  { %479 = vmatpush.msra.mxu3 %v432_v48 }
 0x268   :  { %480 = vmatpush.msra.mxu3 %v431_v31 }
 0x26a   :  { %481 = vmatpush.msra.mxu3 %v430_v49 }
 0x26c   :  { %482 = vmatpush.msra.mxu3 %v429_v50 }
 0x2c8   :  { %v390_v51 = vpop.f32.mrf.mxu3 }
 0x2c9   :  { %463 = vmatmul.f32.vlgmr.msrb.gmra.mxu0 %v390_v51 }
 0x2d0   :  { %v410_v52 = vpop.f32.mrf.mxu3 }
 0x2d1   :  { %483 = vmatmul.f32.vlgmr.msra.gmra.mxu3 %v410_v52 }
 0x346   :  { %v464_v58 = vpop.f32.mrf.mxu0 }
 0x347   :  { %v465_v59 = vadd.f32 %v565_v57, %v464_v58 }
 0x354   :  { %v484_v60 = vpop.f32.mrf.mxu3 }
 0x355   :  { %v485_v61 = vadd.f32 %v484_v60, %v465_v59 }
 0x357   :  { %vm487_vm9 = vcmp.gt.f32.partialorder %v485_v61, 0.0  ;;  %v488_v62 = vmul.f32 0.1, %v485_v61 }
 0x359   :  { %v489_v63 = vsel %vm487_vm9, %v485_v61, %v488_v62 }
 0x35a   :  { %561 = vmatmul.msk.f32.vlgmr.msra.gmra.mxu0 %vm369_vm2, %v489_v63 }
 0x3d7   :  { %v516_v0 = vpop.f32.mrf.mxu0 }
 0x3d8   :  { %v517_v1 = vadd.f32 %v566_v36, %v516_v0 }
 0x3da   :  { %v562_v2 = vmul.f32 -1.442695, %v517_v1 }
 0x3dc   :  { %577 = vpow2.f32 %v562_v2 }
 0x3e2   :  { %v578_v3 = vpop.eup %577 }
 0x3e3   :  { %v523_v4 = vadd.f32 1.0, %v578_v3 }
 0x3e5   :  { %579 = vrcp.f32 %v523_v4  ;;  %v535_v41 = vand.u32 2147483648, %v523_v4  ;;  %v533_v9 = vand.u32 2147483647, %v523_v4  ;;  %vm529_vm1 = vweird.f32 %v523_v4 }
 0x3e7   :  { %v536_v11 = vor.u32 1.1754944e-38, %v535_v41  ;;  %vm534_vm6 = vcmp.eq.f32.partialorder %v533_v9, 8.507059e+37 }
 0x3eb   :  { %v580_v5 = vpop.eup %579 }
 0x3ec   :  { %v525_v6 = vmul.f32 %v580_v5, %v523_v4  ;;  %vm530_vm3 = vweird.f32 %v580_v5 }
 0x3ed   :  { %vm531_vm5 = vmor %vm529_vm1, %vm530_vm3 }
 0x3ee   :  { %v526_v7 = vsub.f32 1.0, %v525_v6 }
 0x3f0   :  { %v527_v8 = vmul.f32 %v580_v5, %v526_v7 }
 0x3f2   :  { %v528_v10 = vadd.f32 %v580_v5, %v527_v8 }
 0x3f4   :  { %v532_v12 = vsel %vm531_vm5, %v580_v5, %v528_v10 }
 0x3f5   :  { %v537_v13 = vsel %vm534_vm6, %v536_v11, %v532_v12 }
 0x3f6   :  { %v539_v14 = vsel %vm519_vm4, %v537_v13, %v517_v1 }
 0x3f7   :  { %540 = vst [vmem:[%s975_s5] sm:$0xff] %v539_v14 }

</bundles_post_ra>
